<compile_context>
chip_gen: v7x
topology: tpu7x:2x2x1
jax: 0.10.0
libtpu: 0.0.40
codegen_flags: <defaults>
</compile_context>

<pallas_src>
import jax
import jax.numpy as jnp
from jax.experimental import pallas as pl
from jax.experimental.pallas import tpu as pltpu


def _round_up(x, m):
    return ((x + m - 1) // m) * m


def _cdiv(a, b):
    return -(-a // b)


def _pick_tile(dim, max_tile, align):
    """Tile size <= ~max_tile whose padded extent stays close to `dim`.

    If dim fits in one tile, return the full extent (no alignment / padding
    needed because a full-dim block is always legal)."""
    if dim <= max_tile:
        return dim
    ntiles = _cdiv(dim, max_tile)
    return _round_up(_cdiv(dim, ntiles), align)


# ---------------------------------------------------------------------------
# Kernels
# ---------------------------------------------------------------------------
def _linear_resident_kernel(x_ref, w_ref, b_ref, o_ref):
    """Whole weight resident in VMEM; one MXU matmul + bias per M tile."""
    # In-kernel cast to the weight dtype (bf16 by default): the MXU sees
    # native-rate operands without an extra HBM pass over x in the wrapper.
    x = x_ref[...].astype(w_ref.dtype)
    acc = jnp.dot(x, w_ref[...], preferred_element_type=jnp.float32)
    o_ref[...] = (acc + b_ref[...]).astype(o_ref.dtype)


def _linear_tiled_kernel(x_ref, w_ref, b_ref, o_ref, acc_ref):
    """Fallback for very large weights: (M, N, K) grid, K innermost."""
    k = pl.program_id(2)
    prod = jnp.dot(
        x_ref[...].astype(w_ref.dtype), w_ref[...],
        preferred_element_type=jnp.float32,
    )

    @pl.when(k == 0)
    def _():
        acc_ref[...] = prod            # direct write: skips zero-init + RMW

    @pl.when(k > 0)
    def _():
        acc_ref[...] += prod

    @pl.when(k == pl.num_programs(2) - 1)
    def _():
        o_ref[...] = (acc_ref[...] + b_ref[...]).astype(o_ref.dtype)


# ---------------------------------------------------------------------------
# Wrapper (SequenceWise semantics: flatten leading dims, Linear, restore)
# ---------------------------------------------------------------------------
def sequence_wise_linear(x, weight, bias, *, use_bf16=True, force_tiled=False):
    """SequenceWise(nn.Linear(d_in, d_out)) forward.

    Args:
      x:      (n_batch, n_seq, d_in) float32
      weight: (d_out, d_in) float32   -- PyTorch nn.Linear layout
      bias:   (d_out,)      float32
    Returns:
      (n_batch, n_seq, d_out) float32
    """
    n_batch, n_seq, d_in = x.shape
    d_out = weight.shape[0]
    m = n_batch * n_seq

    x2d = x.reshape(m, d_in)                           # glue: flatten (view)
    w_t = weight.T                                     # (d_in, d_out)
    if use_bf16:
        # Weight is small relative to x; one-time cheap cast in the wrapper.
        w_t = w_t.astype(jnp.bfloat16)
    b2d = bias.reshape(1, d_out)
    out_dtype = x.dtype

    # Advisory only: does not account for any re-streaming in the fallback.
    cost = pl.CostEstimate(
        flops=2 * m * d_in * d_out,
        transcendentals=0,
        bytes_accessed=(x2d.size * x2d.dtype.itemsize
                        + w_t.size * w_t.dtype.itemsize
                        + m * d_out * x.dtype.itemsize),
    )

    # ---------------- path selection ----------------
    w_bytes = d_in * d_out * w_t.dtype.itemsize
    resident_ok = (not force_tiled) and (2 * w_bytes <= (8 << 20))  # 2x-buffered
    if resident_ok:
        # Double-buffered f32 x tile + f32 out tile budget (<< v7x 64 MiB VMEM).
        max_tile_m = min(1024, (24 << 20) // ((d_in + d_out) * 8))
        max_tile_m = (max_tile_m // 8) * 8
        resident_ok = max_tile_m >= 128 or m <= max(max_tile_m, 8)

    if resident_ok:
        # ---- Resident-weight fast path: grid over M only -----------------
        tile_m = _pick_tile(m, max(max_tile_m, 8), 8)
        pm = _round_up(m, tile_m)
        x_p = x2d if pm == m else jnp.pad(x2d, ((0, pm - m), (0, 0)))
        gm = pm // tile_m

        out_p = pl.pallas_call(
            _linear_resident_kernel,
            out_shape=jax.ShapeDtypeStruct((pm, d_out), out_dtype),
            grid_spec=pltpu.PrefetchScalarGridSpec(
                num_scalar_prefetch=0,
                grid=(gm,),
                in_specs=[
                    pl.BlockSpec((tile_m, d_in), lambda i: (i, 0)),
                    pl.BlockSpec((d_in, d_out), lambda i: (0, 0)),   # resident
                    pl.BlockSpec((1, d_out), lambda i: (0, 0)),
                ],
                out_specs=pl.BlockSpec((tile_m, d_out), lambda i: (i, 0)),
            ),
            compiler_params=pltpu.CompilerParams(
                dimension_semantics=("parallel",),
                vmem_limit_bytes=48 << 20,
            ),
            cost_estimate=cost,
        )(x_p, w_t, b2d)

        out2d = out_p if pm == m else out_p[:m]
    else:
        # ---- Fallback: (M, N, K) tiled, f32 VMEM accumulator, K innermost --
        tile_m = _pick_tile(m, 1024, 8)
        tile_k = _pick_tile(d_in, 512, 128)
        tile_n = _pick_tile(d_out, 512, 128)

        pm = _round_up(m, tile_m)
        pk = _round_up(d_in, tile_k)
        pn = _round_up(d_out, tile_n)

        x_p = x2d
        if (pm, pk) != (m, d_in):
            x_p = jnp.pad(x2d, ((0, pm - m), (0, pk - d_in)))   # zero-K pad is exact
        w_p = w_t
        if (pk, pn) != (d_in, d_out):
            w_p = jnp.pad(w_t, ((0, pk - d_in), (0, pn - d_out)))
        b_p = b2d if pn == d_out else jnp.pad(b2d, ((0, 0), (0, pn - d_out)))

        gm, gn, gk = pm // tile_m, pn // tile_n, pk // tile_k

        out_p = pl.pallas_call(
            _linear_tiled_kernel,
            out_shape=jax.ShapeDtypeStruct((pm, pn), out_dtype),
            grid_spec=pltpu.PrefetchScalarGridSpec(
                num_scalar_prefetch=0,
                grid=(gm, gn, gk),
                in_specs=[
                    pl.BlockSpec((tile_m, tile_k), lambda i, j, k: (i, k)),
                    pl.BlockSpec((tile_k, tile_n), lambda i, j, k: (k, j)),
                    pl.BlockSpec((1, tile_n), lambda i, j, k: (0, j)),
                ],
                out_specs=pl.BlockSpec((tile_m, tile_n), lambda i, j, k: (i, j)),
                scratch_shapes=[pltpu.VMEM((tile_m, tile_n), jnp.float32)],
            ),
            compiler_params=pltpu.CompilerParams(
                dimension_semantics=("parallel", "parallel", "arbitrary"),
                vmem_limit_bytes=48 << 20,
            ),
            cost_estimate=cost,
        )(x_p, w_p, b_p)

        out2d = out_p if (pm, pn) == (m, d_out) else out_p[:m, :d_out]

    return out2d.reshape(n_batch, n_seq, d_out)        # glue: restore dims


if __name__ == "__main__":
    n_batch, n_seq, d_in, d_out = 2, 8, 32, 32

    key = jax.random.PRNGKey(0)
    kx, kw, kb = jax.random.split(key, 3)

    x = jax.random.normal(kx, (n_batch, n_seq, d_in), dtype=jnp.float32)
    # PyTorch-layout Linear params: W (d_out, d_in), b (d_out,)
    w = jax.random.normal(kw, (d_out, d_in), dtype=jnp.float32) * 0.05
    b = jax.random.normal(kb, (d_out,), dtype=jnp.float32) * 0.05

    # Plain-JAX SequenceWise(Linear) reference (f32).
    ref = (x.reshape(-1, d_in) @ w.T + b).reshape(n_batch, n_seq, d_out)

    # Fast path (resident weight, bf16 MXU operands, f32 accumulation).
    out = sequence_wise_linear(x, w, b)
    jax.block_until_ready(out)
    assert out.shape == (n_batch, n_seq, d_out)
    # bf16 MXU operands -> loosened tolerance vs. the f32 reference.
    assert jnp.allclose(out, ref, atol=2e-2, rtol=2e-2)

    # Also exercise the tiled fallback path for correctness.
    out_t = sequence_wise_linear(x, w, b, force_tiled=True)
    jax.block_until_ready(out_t)
    assert jnp.allclose(out_t, ref, atol=2e-2, rtol=2e-2)

    print("KERNEL_OK")
</pallas_src>

<mosaic_0001>
module attributes {stable_mosaic.version = 11 : i64} {
  func.func @_linear_resident_kernel(%arg0: i32, %arg1: memref<16x32xf32, #tpu.memory_space<vmem>>, %arg2: memref<32x32xbf16, #tpu.memory_space<vmem>>, %arg3: memref<1x32xf32, #tpu.memory_space<vmem>>, %arg4: memref<16x32xf32, #tpu.memory_space<vmem>>) attributes {dimension_semantics = [#tpu.dimension_semantics<parallel>], iteration_bounds = array<i64: 1>, scalar_prefetch = 0 : i64, scratch_operands = 0 : i64, tpu.core_type = #tpu.core_type<tc>, window_params = [{transform_indices = @transform_0, window_bounds = array<i64: 16, 32>}, {pipeline_mode = #tpu.pipeline_mode<synchronous>, transform_indices = @transform_1, window_bounds = array<i64: 32, 32>}, {pipeline_mode = #tpu.pipeline_mode<synchronous>, transform_indices = @transform_2, window_bounds = array<i64: 1, 32>}, {transform_indices = @transform_3, window_bounds = array<i64: 16, 32>}]} {
    %c0 = arith.constant 0 : index
    %c0_0 = arith.constant 0 : index
    %0 = vector.load %arg1[%c0, %c0_0] : memref<16x32xf32, #tpu.memory_space<vmem>>, vector<16x32xf32>
    %1 = arith.truncf %0 : vector<16x32xf32> to vector<16x32xbf16>
    %c0_1 = arith.constant 0 : index
    %c0_2 = arith.constant 0 : index
    %2 = vector.load %arg2[%c0_1, %c0_2] : memref<32x32xbf16, #tpu.memory_space<vmem>>, vector<32x32xbf16>
    %cst = arith.constant dense<0.000000e+00> : vector<16x32xf32>
    %3 = tpu.matmul %1, %2, %cst {dimension_numbers = #tpu.dot_dimension_numbers<[1], [0], [0], [1], [0, 0, 1, 1], [], []>} : vector<16x32xbf16>, vector<32x32xbf16>, vector<16x32xf32> -> vector<16x32xf32>
    %c0_3 = arith.constant 0 : index
    %c0_4 = arith.constant 0 : index
    %4 = vector.load %arg3[%c0_3, %c0_4] : memref<1x32xf32, #tpu.memory_space<vmem>>, vector<1x32xf32>
    %5 = vector.broadcast %4 : vector<1x32xf32> to vector<16x32xf32>
    %6 = arith.addf %3, %5 : vector<16x32xf32>
    %c0_5 = arith.constant 0 : index
    %c0_6 = arith.constant 0 : index
    %7 = vector.load %arg4[%c0_5, %c0_6] : memref<16x32xf32, #tpu.memory_space<vmem>>, vector<16x32xf32>
    tpu.vector_store %arg4[%c0_5, %c0_6], %6 {strides = array<i32>} : memref<16x32xf32, #tpu.memory_space<vmem>>, vector<16x32xf32>,
    return
  }
  func.func @transform_0(%arg0: i32) -> (i32, i32) {
    %c0_i32 = arith.constant 0 : i32
    %c0_i32_0 = arith.constant 0 : i32
    return %arg0, %c0_i32 : i32, i32
  }
  func.func @transform_1(%arg0: i32) -> (i32, i32) {
    %c0_i32 = arith.constant 0 : i32
    %c0_i32_0 = arith.constant 0 : i32
    %c0_i32_1 = arith.constant 0 : i32
    return %c0_i32, %c0_i32_0 : i32, i32
  }
  func.func @transform_2(%arg0: i32) -> (i32, i32) {
    %c0_i32 = arith.constant 0 : i32
    %c0_i32_0 = arith.constant 0 : i32
    %c0_i32_1 = arith.constant 0 : i32
    return %c0_i32, %c0_i32_0 : i32, i32
  }
  func.func @transform_3(%arg0: i32) -> (i32, i32) {
    %c0_i32 = arith.constant 0 : i32
    %c0_i32_0 = arith.constant 0 : i32
    return %arg0, %c0_i32 : i32, i32
  }
}

</mosaic_0001>

<bundles_post_ra>
// kernel: tpu_custom_call.1
= control target key start
LH: loop header
LB: loop body
LE: loop exit
PB: predicated region body
PF: predicated region fallthrough
CT: control target
= control target key end

     0   :  { %8 = vsyncpa [#allocation3], 0  ;;  %s307_s0 = inlined_call_operand.hbm [shape: f32[16,32], index: 0, kind: input, shape index: {}]   ;;  %s308_s1 = inlined_call_operand.hbm [shape: bf16[32,32], index: 1, kind: input, shape index: {}]   ;;  %s309_s2 = inlined_call_operand.vmem [shape: f32[1,32], index: 2, kind: input, shape index: {}]   ;;  %s310_s3 = inlined_call_operand.hbm [shape: f32[16,32], index: 3, kind: output, shape index: {}]  }
   0x1   :  { %9 = vsyncpa [#allocation6], 0 }
   0x2   :  { %10 = vsyncpa [#allocation4], 0  ;;  %s233_s12 = smov [#allocation2]   ;;  %s161_s16 = scalar_lea.hbm %s307_s0, 256 }
   0x3   :  { %s16_s13 = sshll.u32 %s233_s12, 4  ;;  %p162_p0 = scmp.ne.s32.totalorder %s307_s0, %s161_s16  ;;  %s17_s13 = int_to_ptr.vmem [resolvable:$true] %s16_s13 }
   0x4   :  { %p165_p1 = scmp.lt.u32.totalorder %s161_s16, %s307_s0 }
   0x6   :  { %p167_p2 = pnand %p165_p1, %p162_p0 }
   0x8   :  { %170 = shalt.err (!%p167_p2)
}
   0x9   :  { %s171_s21 = scalar_lea.vmem %s17_s13, 256  ;;  %p176_p4 = scmp.lt.s32.totalorder %s17_s13, %s17_s13 }
   0xa   :  { %p172_p3 = scmp.ne.s32.totalorder %s17_s13, %s171_s21  ;;  %p177_p5 = scmp.lt.s32.totalorder %s171_s21, %s171_s21 }
   0xc   :  { %p178_p6 = por %p177_p5, %p176_p4 }
   0xe   :  { %p179_p7 = pnand %p178_p6, %p172_p3 }
  0x10   :  { %182 = shalt.err (!%p179_p7)
}
  0x11   :  { %s234_s22 = smov 128   ;;  %s235_s23 = smov 8  }
  0x12   :  { %22 = dma.hbm_to_vmem [thread:$0]  %s307_s0, 256, %s17_s13, [#allocation3], %s234_s22, %s234_s22, %s235_s23  }
  0x13   :  { %s236_s26 = smov [#allocation5]   ;;  %s183_s30 = scalar_lea.hbm %s308_s1, 256 }
  0x14   :  { %s28_s27 = sshll.u32 %s236_s26, 4  ;;  %p184_p8 = scmp.ne.s32.totalorder %s308_s1, %s183_s30  ;;  %s29_s27 = int_to_ptr.vmem [resolvable:$true] %s28_s27 }
  0x15   :  { %p187_p9 = scmp.lt.u32.totalorder %s183_s30, %s308_s1 }
  0x17   :  { %p189_p10 = pnand %p187_p9, %p184_p8 }
  0x19   :  { %192 = shalt.err (!%p189_p10)
}
  0x1a   :  { %s193_s8 = scalar_lea.vmem %s29_s27, 256  ;;  %p198_p12 = scmp.lt.s32.totalorder %s29_s27, %s29_s27 }
  0x1b   :  { %p194_p11 = scmp.ne.s32.totalorder %s29_s27, %s193_s8  ;;  %p199_p13 = scmp.lt.s32.totalorder %s193_s8, %s193_s8 }
  0x1d   :  { %p200_p0 = por %p199_p13, %p198_p12 }
  0x1f   :  { %p201_p1 = pnand %p200_p0, %p194_p11 }
  0x21   :  { %204 = shalt.err (!%p201_p1)
}
  0x22   :  { %s237_s0 = smov 64   ;;  %s238_s9 = smov 4  }
  0x23   :  { %34 = dma.hbm_to_vmem [thread:$0]  %s308_s1, 256, %s29_s27, [#allocation6], %s237_s0, %s237_s0, %s238_s9  }
  0x24   :  { %227 = dma.done.wait [#allocation3], 256  }
  0x25   :  { %228 = vsyncadd [#allocation3], 4294967040 }
  0x26   :  { %229 = dma.done.wait [#allocation6], 256  }
  0x27   :  { %230 = vsyncadd [#allocation6], 4294967040  ;;  %v239_v0 = vmov 0.0   ;;  %vm240_vm0 = vmmov 0   ;;  %v159_v1 = vld [vmem:[#allocation5] sm:$0xff]   ;;  %v160_v2 = vld [vmem:[#allocation5 + $0x8] sm:$0xff]  }
  0x28   :  { %142 = vmatprep.subr.bf16.mxu0 %v239_v0  ;;  %146 = vmatprep.mubr.msk.bf16.mxu0 %vm240_vm0, %v239_v0  ;;  %v44_v3 = vld [vmem:[#allocation2] sm:$0xff]  ;;  %v45_v4 = vld [vmem:[#allocation2 + $0x8] sm:$0xff]  ;;  %vm70_vm1 = vcmask 261120   ;;  %s241_s13 = smov [#allocation7]  }
  0x29   :  { %143 = vmatpush3.bf16.msra.mxu0 %v159_v1  ;;  %v46_v5 = vpack.c.bf16 %v45_v4, %v44_v3  ;;  %v135_v6 = vld [vmem:[%s309_s2] ss:$0 sm:$0xff]  ;;  %s122_s14 = sshll.u32 %s241_s13, 4  ;;  %s123_s14 = int_to_ptr.vmem [resolvable:$true] %s122_s14 }
  0x2a   :  { %144 = vmatprep.subr.bf16.mxu0 %v239_v0  ;;  %s205_s15 = scalar_lea.vmem %s123_s14, 256  ;;  %p210_p3 = scmp.lt.s32.totalorder %s123_s14, %s123_s14 }
  0x2b   :  { %p206_p2 = scmp.ne.s32.totalorder %s123_s14, %s205_s15  ;;  %p211_p4 = scmp.lt.s32.totalorder %s205_s15, %s205_s15 }
  0x2d   :  { %145 = vmatpush3.bf16.msra.mxu0 %v160_v2  ;;  %p212_p5 = por %p211_p4, %p210_p3 }
  0x2f   :  { %p213_p6 = pnand %p212_p5, %p206_p2 }
  0x30   :  { %147 = vmatmul.mubr.msk.bf16.vlgmr.msra.gmra.mrb[0].mxu0 %vm70_vm1, %v46_v5 }
 0x103   :  { %v108_v7 = vpop.f32.mrb[0].mxu0 }
 0x104   :  { %v109_v8 = vadd.f32 %v135_v6, %v108_v7  ;;  %v148_v9 = vpop.f32.mrb[1].mxu0 }
 0x105   :  { %v111_v10 = vpop.f32.mrb[2].mxu0 }
 0x106   :  { %115 = vst.msk [vmem:[#allocation7] sm:$0xff] %vm70_vm1, %v109_v8  ;;  %v112_v11 = vadd.f32 %v135_v6, %v111_v10  ;;  %v149_v12 = vpop.f32.mrb[3].mxu0 }
 0x108   :  { %116 = vst.msk [vmem:[#allocation7 + $0x8] sm:$0xff] %vm70_vm1, %v112_v11 }
 0x109   :  { %216 = shalt.err (!%p213_p6)
}
 0x10a   :  { %s217_s17 = scalar_lea.hbm %s310_s3, 256 }
 0x10b   :  { %p218_p7 = scmp.ne.s32.totalorder %s310_s3, %s217_s17  ;;  %p221_p8 = scmp.lt.u32.totalorder %s217_s17, %s310_s3 }
 0x10d   :  { %p223_p9 = pnand %p221_p8, %p218_p7 }
 0x10f   :  { %226 = shalt.err (!%p223_p9)
}
 0x110   :  { %128 = dma.vmem_to_hbm [thread:$0]  %s123_s14, 256, %s310_s3, [#allocation4], %s234_s22, %s234_s22, %s235_s23  }
 0x111   :  { %231 = dma.done.wait [#allocation4], 256  }
 0x112   :  { %232 = vsyncadd [#allocation4], 4294967040 }
 0x113   :  { %132 = vsyncpa [#allocation3], 1 }
 0x114   :  { %133 = vsyncpa [#allocation6], 1 }
 0x115   :  { %134 = vsyncpa [#allocation4], 1 }

</bundles_post_ra>
